<compile_context>
chip_gen: v7x
topology: tpu7x:2x2x1
jax: 0.10.0
libtpu: 0.0.40
codegen_flags: <defaults>
</compile_context>

<pallas_src>
import jax
import jax.numpy as jnp
from jax.experimental import pallas as pl
from jax.experimental.pallas import tpu as pltpu


def _round_up(n, m):
    return (n + m - 1) // m * m


def qnet_kernel(x_ref, w1_ref, b1_ref, w2_ref, b2_ref, w3_ref, b3_ref, o_ref):
    # Whole MLP hot path: 3 MXU matmuls (bf16 operands, f32 accumulate) plus
    # f32 VPU bias-add / ReLU.
    x = x_ref[...].astype(jnp.bfloat16)                                   # (TB, S)
    h1 = jnp.dot(x, w1_ref[...], preferred_element_type=jnp.float32) + b1_ref[...]
    h1 = jnp.maximum(h1, 0.0).astype(jnp.bfloat16)                        # (TB, H)
    h2 = jnp.dot(h1, w2_ref[...], preferred_element_type=jnp.float32) + b2_ref[...]
    h2 = jnp.maximum(h2, 0.0).astype(jnp.bfloat16)                        # (TB, H)
    q = jnp.dot(h2, w3_ref[...], preferred_element_type=jnp.float32) + b3_ref[...]
    o_ref[...] = q.astype(o_ref.dtype)                                    # (TB, A)


def prepare_params(params):
    """One-time layout/dtype prep: transpose PyTorch (out,in) weights to
    (in,out) and cast them to bf16 (MXU-native). Biases stay f32 since they
    live on the f32 accumulator path."""
    return {
        "w1": params["w1"].T.astype(jnp.bfloat16),            # (S, H)
        "w2": params["w2"].T.astype(jnp.bfloat16),            # (H, H)
        "w3": params["w3"].T.astype(jnp.bfloat16),            # (H, A)
        "b1": params["b1"].reshape(1, -1).astype(jnp.float32),
        "b2": params["b2"].reshape(1, -1).astype(jnp.float32),
        "b3": params["b3"].reshape(1, -1).astype(jnp.float32),
    }


def _choose_tiling(B, block_b):
    """Return (tb, b_pad, n_tiles) minimizing padded rows.

    B <= block_b : one block covering the whole batch (block dims == array
                   dims, legal for any B -> zero padding, no jnp.pad copy).
    B  > block_b : n_tiles = cdiv(B, block_b); tb = round_up(B/n_tiles, 8),
                   so at most 8*n_tiles - 1 padded rows on the last tile.
    """
    if B <= block_b:
        return B, B, 1
    n_tiles = pl.cdiv(B, block_b)
    tb = _round_up(pl.cdiv(B, n_tiles), 8)
    return tb, tb * n_tiles, n_tiles


def _batch_dim_semantics(n_tiles):
    # v7x has 2 TensorCores per chip: CORE_PARALLEL shards the batch grid axis
    # across them.  Stay on plain "parallel" for single-TC chips (v5e/v6e) and
    # for 1-step grids, where it is the proven-safe path.
    core_parallel = getattr(pltpu, "CORE_PARALLEL", None)
    if core_parallel is not None and n_tiles >= 2:
        kind = jax.devices()[0].device_kind.lower()
        if "v7" in kind:
            return (core_parallel,)
    return ("parallel",)


def qnetwork_forward(x, prepared, *, block_b=1024):
    """x: (B, state_dim) float32. prepared: output of prepare_params()."""
    w1, b1 = prepared["w1"], prepared["b1"]
    w2, b2 = prepared["w2"], prepared["b2"]
    w3, b3 = prepared["w3"], prepared["b3"]

    B, S = x.shape
    A = w3.shape[1]

    tb, b_pad, n_tiles = _choose_tiling(B, block_b)
    if b_pad != B:  # only when B > block_b and tiles don't divide B exactly
        x = jnp.pad(x, ((0, b_pad - B), (0, 0)))

    # Constant index map -> block DMA'd once, stays VMEM-resident across tiles.
    resident = lambda arr: pl.BlockSpec(arr.shape, lambda i: (0, 0))

    out = pl.pallas_call(
        qnet_kernel,
        out_shape=jax.ShapeDtypeStruct((b_pad, A), jnp.float32),
        grid=(n_tiles,),
        in_specs=[
            pl.BlockSpec((tb, S), lambda i: (i, 0)),    # batch-tiled activations
            resident(w1), resident(b1),
            resident(w2), resident(b2),
            resident(w3), resident(b3),
        ],
        out_specs=pl.BlockSpec((tb, A), lambda i: (i, 0)),  # true action width
        compiler_params=pltpu.CompilerParams(
            dimension_semantics=_batch_dim_semantics(n_tiles)),
    )(x, w1, b1, w2, b2, w3, b3)

    return out[:B] if b_pad != B else out


def init_params(key, state_dim, action_dim, hidden=64):
    # PyTorch Linear shapes: weight (out, in), bias (1, out). Deterministic init.
    ks = jax.random.split(key, 6)

    def lin(kw, kb, out_f, in_f):
        bound = 1.0 / jnp.sqrt(in_f)
        w = jax.random.uniform(kw, (out_f, in_f), jnp.float32, -bound, bound)
        b = jax.random.uniform(kb, (1, out_f), jnp.float32, -bound, bound)
        return w, b

    w1, b1 = lin(ks[0], ks[1], hidden, state_dim)
    w2, b2 = lin(ks[2], ks[3], hidden, hidden)
    w3, b3 = lin(ks[4], ks[5], action_dim, hidden)
    return {"w1": w1, "b1": b1, "w2": w2, "b2": b2, "w3": w3, "b3": b3}


if __name__ == "__main__":
    key = jax.random.PRNGKey(0)
    k_x, k_p = jax.random.split(key)

    batch, state_dim, action_dim = 2, 32, 8
    x = jax.random.normal(k_x, (batch, state_dim), jnp.float32)
    params = init_params(k_p, state_dim, action_dim)
    prepared = prepare_params(params)

    out = jax.block_until_ready(qnetwork_forward(x, prepared))
    assert out.shape == (batch, action_dim)

    # Reference 1: exact PyTorch-module semantics in f32 (loose tol because the
    # kernel feeds the MXU bf16 operands; accumulation stays f32).
    def ref_f32(xi):
        h1 = jnp.maximum(xi @ params["w1"].T + params["b1"], 0.0)
        h2 = jnp.maximum(h1 @ params["w2"].T + params["b2"], 0.0)
        return h2 @ params["w3"].T + params["b3"]

    # Reference 2: identical bf16-in / f32-accumulate math in plain JAX (tight tol).
    def ref_bf16(xi):
        h1 = jnp.maximum(
            jnp.dot(xi.astype(jnp.bfloat16), prepared["w1"],
                    preferred_element_type=jnp.float32) + prepared["b1"], 0.0)
        h2 = jnp.maximum(
            jnp.dot(h1.astype(jnp.bfloat16), prepared["w2"],
                    preferred_element_type=jnp.float32) + prepared["b2"], 0.0)
        return jnp.dot(h2.astype(jnp.bfloat16), prepared["w3"],
                       preferred_element_type=jnp.float32) + prepared["b3"]

    assert jnp.allclose(out, ref_f32(x), atol=5e-2, rtol=5e-2)
    assert jnp.allclose(out, ref_bf16(x), atol=1e-3, rtol=1e-3)

    # Multi-tile + ragged-batch path (B > block_b, B not a multiple of the tile):
    # 3 grid steps, only 2 padded rows with the new tiling.
    big_b = 1030
    xb = jax.random.normal(k_x, (big_b, state_dim), jnp.float32)
    outb = jax.block_until_ready(qnetwork_forward(xb, prepared, block_b=512))
    assert outb.shape == (big_b, action_dim)
    assert jnp.allclose(outb, ref_f32(xb), atol=5e-2, rtol=5e-2)
    assert jnp.allclose(outb, ref_bf16(xb), atol=1e-3, rtol=1e-3)

    print("KERNEL_OK")
</pallas_src>

<mosaic_0001>
module attributes {stable_mosaic.version = 11 : i64} {
  func.func @qnet_kernel(%arg0: i32, %arg1: memref<2x32xf32, #tpu.memory_space<vmem>>, %arg2: memref<32x64xbf16, #tpu.memory_space<vmem>>, %arg3: memref<1x64xf32, #tpu.memory_space<vmem>>, %arg4: memref<64x64xbf16, #tpu.memory_space<vmem>>, %arg5: memref<1x64xf32, #tpu.memory_space<vmem>>, %arg6: memref<64x8xbf16, #tpu.memory_space<vmem>>, %arg7: memref<1x8xf32, #tpu.memory_space<vmem>>, %arg8: memref<2x8xf32, #tpu.memory_space<vmem>>) attributes {dimension_semantics = [#tpu.dimension_semantics<parallel>], iteration_bounds = array<i64: 1>, scalar_prefetch = 0 : i64, scratch_operands = 0 : i64, tpu.core_type = #tpu.core_type<tc>, window_params = [{transform_indices = @transform_0, window_bounds = array<i64: 2, 32>}, {pipeline_mode = #tpu.pipeline_mode<synchronous>, transform_indices = @transform_1, window_bounds = array<i64: 32, 64>}, {pipeline_mode = #tpu.pipeline_mode<synchronous>, transform_indices = @transform_2, window_bounds = array<i64: 1, 64>}, {pipeline_mode = #tpu.pipeline_mode<synchronous>, transform_indices = @transform_3, window_bounds = array<i64: 64, 64>}, {pipeline_mode = #tpu.pipeline_mode<synchronous>, transform_indices = @transform_4, window_bounds = array<i64: 1, 64>}, {pipeline_mode = #tpu.pipeline_mode<synchronous>, transform_indices = @transform_5, window_bounds = array<i64: 64, 8>}, {pipeline_mode = #tpu.pipeline_mode<synchronous>, transform_indices = @transform_6, window_bounds = array<i64: 1, 8>}, {transform_indices = @transform_7, window_bounds = array<i64: 2, 8>}]} {
    %c0 = arith.constant 0 : index
    %c0_0 = arith.constant 0 : index
    %0 = vector.load %arg1[%c0, %c0_0] : memref<2x32xf32, #tpu.memory_space<vmem>>, vector<2x32xf32>
    %1 = arith.truncf %0 : vector<2x32xf32> to vector<2x32xbf16>
    %c0_1 = arith.constant 0 : index
    %c0_2 = arith.constant 0 : index
    %2 = vector.load %arg2[%c0_1, %c0_2] : memref<32x64xbf16, #tpu.memory_space<vmem>>, vector<32x64xbf16>
    %cst = arith.constant dense<0.000000e+00> : vector<2x64xf32>
    %3 = tpu.matmul %1, %2, %cst {dimension_numbers = #tpu.dot_dimension_numbers<[1], [0], [0], [1], [0, 0, 1, 1], [], []>} : vector<2x32xbf16>, vector<32x64xbf16>, vector<2x64xf32> -> vector<2x64xf32>
    %c0_3 = arith.constant 0 : index
    %c0_4 = arith.constant 0 : index
    %4 = vector.load %arg3[%c0_3, %c0_4] : memref<1x64xf32, #tpu.memory_space<vmem>>, vector<1x64xf32>
    %5 = vector.broadcast %4 : vector<1x64xf32> to vector<2x64xf32>
    %6 = arith.addf %3, %5 : vector<2x64xf32>
    %cst_5 = arith.constant 0.000000e+00 : f32
    %7 = vector.broadcast %cst_5 : f32 to vector<2x64xf32>
    %8 = arith.maximumf %6, %7 : vector<2x64xf32>
    %9 = arith.truncf %8 : vector<2x64xf32> to vector<2x64xbf16>
    %c0_6 = arith.constant 0 : index
    %c0_7 = arith.constant 0 : index
    %10 = vector.load %arg4[%c0_6, %c0_7] : memref<64x64xbf16, #tpu.memory_space<vmem>>, vector<64x64xbf16>
    %cst_8 = arith.constant dense<0.000000e+00> : vector<2x64xf32>
    %11 = tpu.matmul %9, %10, %cst_8 {dimension_numbers = #tpu.dot_dimension_numbers<[1], [0], [0], [1], [0, 0, 1, 1], [], []>} : vector<2x64xbf16>, vector<64x64xbf16>, vector<2x64xf32> -> vector<2x64xf32>
    %c0_9 = arith.constant 0 : index
    %c0_10 = arith.constant 0 : index
    %12 = vector.load %arg5[%c0_9, %c0_10] : memref<1x64xf32, #tpu.memory_space<vmem>>, vector<1x64xf32>
    %13 = vector.broadcast %12 : vector<1x64xf32> to vector<2x64xf32>
    %14 = arith.addf %11, %13 : vector<2x64xf32>
    %cst_11 = arith.constant 0.000000e+00 : f32
    %15 = vector.broadcast %cst_11 : f32 to vector<2x64xf32>
    %16 = arith.maximumf %14, %15 : vector<2x64xf32>
    %17 = arith.truncf %16 : vector<2x64xf32> to vector<2x64xbf16>
    %c0_12 = arith.constant 0 : index
    %c0_13 = arith.constant 0 : index
    %18 = vector.load %arg6[%c0_12, %c0_13] : memref<64x8xbf16, #tpu.memory_space<vmem>>, vector<64x8xbf16>
    %cst_14 = arith.constant dense<0.000000e+00> : vector<2x8xf32>
    %19 = tpu.matmul %17, %18, %cst_14 {dimension_numbers = #tpu.dot_dimension_numbers<[1], [0], [0], [1], [0, 0, 1, 1], [], []>} : vector<2x64xbf16>, vector<64x8xbf16>, vector<2x8xf32> -> vector<2x8xf32>
    %c0_15 = arith.constant 0 : index
    %c0_16 = arith.constant 0 : index
    %20 = vector.load %arg7[%c0_15, %c0_16] : memref<1x8xf32, #tpu.memory_space<vmem>>, vector<1x8xf32>
    %21 = vector.broadcast %20 : vector<1x8xf32> to vector<2x8xf32>
    %22 = arith.addf %19, %21 : vector<2x8xf32>
    %c0_17 = arith.constant 0 : index
    %c0_18 = arith.constant 0 : index
    %23 = vector.load %arg8[%c0_17, %c0_18] : memref<2x8xf32, #tpu.memory_space<vmem>>, vector<2x8xf32>
    tpu.vector_store %arg8[%c0_17, %c0_18], %22 {strides = array<i32>} : memref<2x8xf32, #tpu.memory_space<vmem>>, vector<2x8xf32>,
    return
  }
  func.func @transform_0(%arg0: i32) -> (i32, i32) {
    %c0_i32 = arith.constant 0 : i32
    %c0_i32_0 = arith.constant 0 : i32
    return %arg0, %c0_i32 : i32, i32
  }
  func.func @transform_1(%arg0: i32) -> (i32, i32) {
    %c0_i32 = arith.constant 0 : i32
    %c0_i32_0 = arith.constant 0 : i32
    %c0_i32_1 = arith.constant 0 : i32
    return %c0_i32, %c0_i32_0 : i32, i32
  }
  func.func @transform_2(%arg0: i32) -> (i32, i32) {
    %c0_i32 = arith.constant 0 : i32
    %c0_i32_0 = arith.constant 0 : i32
    %c0_i32_1 = arith.constant 0 : i32
    return %c0_i32, %c0_i32_0 : i32, i32
  }
  func.func @transform_3(%arg0: i32) -> (i32, i32) {
    %c0_i32 = arith.constant 0 : i32
    %c0_i32_0 = arith.constant 0 : i32
    %c0_i32_1 = arith.constant 0 : i32
    return %c0_i32, %c0_i32_0 : i32, i32
  }
  func.func @transform_4(%arg0: i32) -> (i32, i32) {
    %c0_i32 = arith.constant 0 : i32
    %c0_i32_0 = arith.constant 0 : i32
    %c0_i32_1 = arith.constant 0 : i32
    return %c0_i32, %c0_i32_0 : i32, i32
  }
  func.func @transform_5(%arg0: i32) -> (i32, i32) {
    %c0_i32 = arith.constant 0 : i32
    %c0_i32_0 = arith.constant 0 : i32
    %c0_i32_1 = arith.constant 0 : i32
    return %c0_i32, %c0_i32_0 : i32, i32
  }
  func.func @transform_6(%arg0: i32) -> (i32, i32) {
    %c0_i32 = arith.constant 0 : i32
    %c0_i32_0 = arith.constant 0 : i32
    %c0_i32_1 = arith.constant 0 : i32
    return %c0_i32, %c0_i32_0 : i32, i32
  }
  func.func @transform_7(%arg0: i32) -> (i32, i32) {
    %c0_i32 = arith.constant 0 : i32
    %c0_i32_0 = arith.constant 0 : i32
    return %arg0, %c0_i32 : i32, i32
  }
}

</mosaic_0001>

<bundles_post_ra>
// kernel: tpu_custom_call.1
= control target key start
LH: loop header
LB: loop body
LE: loop exit
PB: predicated region body
PF: predicated region fallthrough
CT: control target
= control target key end

     0   :  { %12 = vsyncpa [#allocation3], 0  ;;  %s533_s0 = inlined_call_operand.vmem [shape: f32[2,32], index: 0, kind: input, shape index: {}]   ;;  %s534_s1 = inlined_call_operand.hbm [shape: bf16[32,64], index: 1, kind: input, shape index: {}]   ;;  %s535_s2 = inlined_call_operand.vmem [shape: f32[1,64], index: 2, kind: input, shape index: {}]   ;;  %s536_s3 = inlined_call_operand.vmem [shape: bf16[64,64], index: 3, kind: input, shape index: {}]   ;;  %s537_s4 = inlined_call_operand.vmem [shape: f32[1,64], index: 4, kind: input, shape index: {}]   ;;  %s538_s5 = inlined_call_operand.vmem [shape: bf16[64,8], index: 5, kind: input, shape index: {}]   ;;  %s539_s6 = inlined_call_operand.vmem [shape: f32[1,8], index: 6, kind: input, shape index: {}]   ;;  %s540_s7 = inlined_call_operand.hbm [shape: f32[2,8], index: 7, kind: output, shape index: {}]  }
   0x1   :  { %13 = vsyncpa [#allocation4], 0  ;;  %s422_s24 = smov [#allocation2]   ;;  %s374_s28 = scalar_lea.hbm %s534_s1, 256 }
   0x2   :  { %s21_s25 = sshll.u32 %s422_s24, 4  ;;  %p375_p0 = scmp.ne.s32.totalorder %s534_s1, %s374_s28  ;;  %s22_s25 = int_to_ptr.vmem [resolvable:$true] %s21_s25 }
   0x3   :  { %p378_p1 = scmp.lt.u32.totalorder %s374_s28, %s534_s1 }
   0x5   :  { %p380_p2 = pnand %p378_p1, %p375_p0 }
   0x7   :  { %383 = shalt.err (!%p380_p2)
}
   0x8   :  { %s384_s10 = scalar_lea.vmem %s22_s25, 256  ;;  %p389_p4 = scmp.lt.s32.totalorder %s22_s25, %s22_s25 }
   0x9   :  { %p385_p3 = scmp.ne.s32.totalorder %s22_s25, %s384_s10  ;;  %p390_p5 = scmp.lt.s32.totalorder %s384_s10, %s384_s10 }
   0xb   :  { %p391_p6 = por %p390_p5, %p389_p4 }
   0xd   :  { %p392_p7 = pnand %p391_p6, %p385_p3 }
   0xf   :  { %395 = shalt.err (!%p392_p7)
}
  0x10   :  { %s423_s11 = smov 64   ;;  %s424_s12 = smov 4  }
  0x11   :  { %27 = dma.hbm_to_vmem [thread:$0]  %s534_s1, 256, %s22_s25, [#allocation3], %s423_s11, %s423_s11, %s424_s12  }
  0x12   :  { %418 = dma.done.wait [#allocation3], 256  }
  0x13   :  { %419 = vsyncadd [#allocation3], 4294967040  ;;  %v425_v0 = vmov 0.0   ;;  %vm426_vm0 = vmmov 0   ;;  %v364_v1 = vld [vmem:[#allocation2] sm:$0xff]   ;;  %v365_v2 = vld [vmem:[#allocation2 + $0x8] sm:$0xff]  }
  0x14   :  { %326 = vmatprep.subr.bf16.mxu0 %v425_v0  ;;  %330 = vmatprep.mubr.msk.bf16.mxu0 %vm426_vm0, %v425_v0  ;;  %v42_v3 = vld [vmem:[%s533_s0] sm:$0x3]  ;;  %vm67_vm1 = vcmask 261120   ;;  %v367_v5 = vld [vmem:[%s536_s3 + $0x8] sm:$0xff]   ;;  %v368_v7 = vld [vmem:[%s536_s3 + $0x10] sm:$0xff]   ;;  %vm152_vm2 = vcmask 523264  }
  0x15   :  { %334 = vmatprep.subr.bf16.mxu1 %v425_v0  ;;  %342 = vmatprep.mubr.msk.bf16.mxu1 %vm426_vm0, %v425_v0  ;;  %v366_v4 = vld [vmem:[%s536_s3] sm:$0xff]   ;;  %v43_v6 = vpack.c.bf16 %v42_v3, %v42_v3  ;;  %v369_v8 = vld [vmem:[%s536_s3 + $0x18] sm:$0xff]   ;;  %v371_v10 = vld [vmem:[%s538_s5 + $0x8] sm:$0xff]   ;;  %s427_s12 = smov [#allocation5]   ;;  %vm280_vm3 = vcmask 58368  }
  0x16   :  { %327 = vmatpush3.bf16.msra.mxu0 %v364_v1  ;;  %335 = vmatpush3.bf16.msra.mxu1 %v366_v4  ;;  %v370_v9 = vld [vmem:[%s538_s5] sm:$0xff]   ;;  %v372_v19 = vld [vmem:[%s538_s5 + $0x10] sm:$0xff]   ;;  %v373_v20 = vld [vmem:[%s538_s5 + $0x18] sm:$0xff]   ;;  %s288_s5 = sshll.u32 %s427_s12, 4  ;;  %s289_s5 = int_to_ptr.vmem [resolvable:$true] %s288_s5 }
  0x17   :  { %328 = vmatprep.subr.bf16.mxu0 %v425_v0  ;;  %336 = vmatprep.subr.bf16.mxu1 %v425_v0  ;;  %v297_v11 = vld [vmem:[%s535_s2] ss:$0 sm:$0xff]  ;;  %p401_p9 = scmp.lt.s32.totalorder %s289_s5, %s289_s5 }
  0x18   :  { %v301_v21 = vld [vmem:[%s537_s4] ss:$0 sm:$0xff]  ;;  %s396_s4 = scalar_lea.vmem %s289_s5, 32 }
  0x19   :  { %v307_v29 = vld [vmem:[%s539_s6] ss:$0 sm:$0xff]  ;;  %p397_p8 = scmp.ne.s32.totalorder %s289_s5, %s396_s4  ;;  %p402_p10 = scmp.lt.s32.totalorder %s396_s4, %s396_s4 }
  0x1a   :  { %329 = vmatpush3.bf16.msra.mxu0 %v365_v2  ;;  %337 = vmatpush3.bf16.msra.mxu1 %v367_v5 }
  0x1b   :  { %346 = vmatprep.subr.bf16.mxu0 %v425_v0  ;;  %338 = vmatprep.subr.bf16.mxu1 %v425_v0  ;;  %p403_p11 = por %p402_p10, %p401_p9 }
  0x1d   :  { %331 = vmatmul.mubr.msk.bf16.vlgmr.msra.gmra.mrb[0].mxu0 %vm67_vm1, %v43_v6  ;;  %p404_p12 = pnand %p403_p11, %p397_p8 }
  0x1e   :  { %354 = vmatprep.mubr.msk.bf16.mxu0 %vm426_vm0, %v425_v0  ;;  %339 = vmatpush3.bf16.msra.mxu1 %v368_v7 }
  0x1f   :  { %340 = vmatprep.subr.bf16.mxu1 %v425_v0  ;;  %347 = vmatpush3.bf16.msra.mxu0 %v370_v9 }
  0x20   :  { %348 = vmatprep.subr.bf16.mxu0 %v425_v0 }
  0x22   :  { %341 = vmatpush3.bf16.msra.mxu1 %v369_v8 }
  0x23   :  { %349 = vmatpush3.bf16.msra.mxu0 %v371_v10 }
  0x24   :  { %350 = vmatprep.subr.bf16.mxu0 %v425_v0 }
  0x27   :  { %351 = vmatpush3.bf16.msra.mxu0 %v372_v19 }
  0x28   :  { %352 = vmatprep.subr.bf16.mxu0 %v425_v0 }
  0x2b   :  { %353 = vmatpush3.bf16.msra.mxu0 %v373_v20 }
  0xf0   :  { %v105_v12 = vpop.f32.mrb[0].mxu0 }
  0xf1   :  { %v106_v13 = vadd.f32 %v297_v11, %v105_v12  ;;  %v332_v14 = vpop.f32.mrb[1].mxu0 }
  0xf2   :  { %v108_v15 = vpop.f32.mrb[2].mxu0 }
  0xf3   :  { %v111_v16 = vmax.f32 %v106_v13, 0.0  ;;  %v333_v17 = vpop.f32.mrb[3].mxu0 }
  0xf5   :  { %v112_v18 = vpack.c.bf16 %v111_v16, %v111_v16 }
  0xf7   :  { %343 = vmatmul.mubr.msk.bf16.vlgmr.msra.gmra.mrb[0].mxu1 %vm152_vm2, %v112_v18 }
 0x1ca   :  { %v190_v22 = vpop.f32.mrb[0].mxu1 }
 0x1cb   :  { %v191_v23 = vadd.f32 %v301_v21, %v190_v22  ;;  %v344_v24 = vpop.f32.mrb[1].mxu1 }
 0x1cc   :  { %v193_v25 = vpop.f32.mrb[2].mxu1 }
 0x1cd   :  { %v196_v26 = vmax.f32 %v191_v23, 0.0  ;;  %v345_v27 = vpop.f32.mrb[3].mxu1 }
 0x1cf   :  { %v197_v28 = vpack.c.bf16 %v196_v26, %v196_v26 }
 0x1d1   :  { %355 = vmatmul.mubr.msk.bf16.vlgmr.msra.gmra.mrb[4].mxu0 %vm152_vm2, %v197_v28 }
 0x2a4   :  { %v274_v30 = vpop.f32.mrb[4].mxu0 }
 0x2a5   :  { %v275_v31 = vadd.f32 %v307_v29, %v274_v30  ;;  %v356_v32 = vpop.f32.mrb[5].mxu0 }
 0x2a6   :  { %v277_v33 = vpop.f32.mrb[6].mxu0 }
 0x2a7   :  { %v357_v34 = vpop.f32.mrb[7].mxu0  ;;  %281 = vst.msk [vmem:[#allocation5] sm:$0x3] %vm280_vm3, %v275_v31 }
 0x2a8   :  { %407 = shalt.err (!%p404_p12)
}
 0x2a9   :  { %s408_s6 = scalar_lea.hbm %s540_s7, 32 }
 0x2aa   :  { %p409_p13 = scmp.ne.s32.totalorder %s540_s7, %s408_s6  ;;  %p412_p0 = scmp.lt.u32.totalorder %s408_s6, %s540_s7 }
 0x2ac   :  { %p414_p1 = pnand %p412_p0, %p409_p13 }
 0x2ae   :  { %417 = shalt.err (!%p414_p1)
}
 0x2af   :  { %291 = dma.vmem_to_hbm [thread:$0]  %s289_s5, 32, %s540_s7, [#allocation4]  }
 0x2b0   :  { %420 = dma.done.wait [#allocation4], 32  }
 0x2b1   :  { %421 = vsyncadd [#allocation4], 4294967264 }
 0x2b2   :  { %295 = vsyncpa [#allocation3], 1 }
 0x2b3   :  { %296 = vsyncpa [#allocation4], 1 }

</bundles_post_ra>
